<compile_context>
chip_gen: v6e
topology: v6e:2x2x1
jax: 0.10.0
libtpu: 0.0.40
codegen_flags: <defaults>
</compile_context>

<pallas_src>
import jax
import jax.numpy as jnp
from jax import lax
from jax.experimental import pallas as pl
from jax.experimental.pallas import tpu as pltpu

_LANE = 128
_BN_EPS = 1e-5
_VMEM_LIMIT = 48 * 1024 * 1024  # leave headroom under v7x's 64 MiB physical VMEM


def _round_up(x, m):
    return ((x + m - 1) // m) * m


# --------------------------------------------------------------------------- #
# Kernel 1: 3-nearest-neighbor inverse-distance interpolation (per (batch, N-tile)).
# --------------------------------------------------------------------------- #
def _interp_kernel(a_ref, b_ref, pts2_ref, out_ref):
    a = a_ref[0]                                  # [TN, CA]  (x, 1, |x|^2, 0-pad)
    bm = b_ref[0]                                 # [S,  CA]  (-2y, |y|^2, 1, 0-pad)
    p2 = pts2_ref[0]                              # [S,  D2p]

    # full [TN, S] squared-distance matrix from one MXU matmul (expanded form).
    d = lax.dot_general(a, bm, (((1,), (1,)), ((), ())),
                        preferred_element_type=jnp.float32)

    col = lax.broadcasted_iota(jnp.int32, d.shape, 1)
    BIG = jnp.float32(3.0e38)
    BIG_I = jnp.int32(2 ** 30)

    w_mat = jnp.zeros_like(d)                     # sparse (3 nonzeros/row) weights
    wsum = jnp.zeros((d.shape[0], 1), jnp.float32)
    dd = d
    # 3 nearest neighbors via iterative masked argmin (ties -> lowest column,
    # matching torch.sort / argsort).
    for _ in range(3):
        dmin = jnp.min(dd, axis=1, keepdims=True)                # [TN, 1]
        cand = jnp.where(dd <= dmin, col, BIG_I)
        first = jnp.min(cand, axis=1, keepdims=True)             # first argmin
        onehot = (col == first).astype(jnp.float32)              # [TN, S]
        w = 1.0 / jnp.maximum(dmin, jnp.float32(1e-10))          # clamp then invert
        w_mat = w_mat + onehot * w
        wsum = wsum + w                                          # avoid [TN,S] reduce
        dd = jnp.where(onehot > 0.0, BIG, dd)                    # mask selected col

    interp = jnp.dot(w_mat, p2, preferred_element_type=jnp.float32)   # [TN, D2p]
    out_ref[0] = (interp * (1.0 / wsum)).astype(out_ref.dtype)


def _interpolate(a_aug, b_aug, pts2_p, tn):
    B, Np, CA = a_aug.shape
    S = b_aug.shape[1]
    D2p = pts2_p.shape[2]
    flops = 2 * B * Np * S * (CA + D2p) + 24 * B * Np * S
    byt = 4 * (B * Np * CA + B * S * (CA + D2p) + B * Np * D2p)
    return pl.pallas_call(
        _interp_kernel,
        out_shape=jax.ShapeDtypeStruct((B, Np, D2p), jnp.float32),
        grid=(B, Np // tn),
        in_specs=[pl.BlockSpec((1, tn, CA), lambda b, n: (b, n, 0)),
                  pl.BlockSpec((1, S, CA), lambda b, n: (b, 0, 0)),
                  pl.BlockSpec((1, S, D2p), lambda b, n: (b, 0, 0))],
        out_specs=pl.BlockSpec((1, tn, D2p), lambda b, n: (b, n, 0)),
        compiler_params=pltpu.CompilerParams(
            dimension_semantics=("parallel", "parallel"),
            vmem_limit_bytes=_VMEM_LIMIT),
        cost_estimate=pl.CostEstimate(flops=flops, transcendentals=0,
                                      bytes_accessed=byt),
    )(a_aug, b_aug, pts2_p)


# --------------------------------------------------------------------------- #
# Kernel 2: shared pointwise MLP, tiled over M = B*N.
#   Each layer kernel: (optionally) normalize previous pre-activation with global
#   BN stats + ReLU, then Conv1d(k=1) matmul + bias, and emit per-tile partial
#   (sum, sum_sq) so the global batch stats can be reduced cheaply in XLA.
# --------------------------------------------------------------------------- #
def _store_y_and_stats(y, y_ref, ps_ref, m_real, tm):
    row = pl.program_id(0) * tm + lax.broadcasted_iota(jnp.int32, (tm, 1), 0)
    valid = (row < m_real).astype(jnp.float32)        # mask padded rows out of stats
    ym = y * valid
    s1 = jnp.sum(ym, axis=0, keepdims=True)           # [1, Cout]
    s2 = jnp.sum(ym * y, axis=0, keepdims=True)       # [1, Cout]
    y_ref[...] = y
    ps_ref[...] = jnp.concatenate([s1, s2], axis=0)[None]   # [1, 2, Cout]


def _bn_relu(x, stats, g, bt):
    mean = stats[0:1, :]
    var = stats[1:2, :]
    return jnp.maximum((x - mean) * lax.rsqrt(var + _BN_EPS) * g + bt, 0.0)


def _make_first2_kernel(m_real, tm, mdt):
    # first layer, concat fused away: y = p1 @ W_top + interp @ W_bot + b
    def kernel(p1_ref, it_ref, wa_ref, wb_ref, b_ref, y_ref, ps_ref):
        y = (jnp.dot(p1_ref[...].astype(mdt), wa_ref[...],
                     preferred_element_type=jnp.float32)
             + jnp.dot(it_ref[...].astype(mdt), wb_ref[...],
                       preferred_element_type=jnp.float32)
             + b_ref[...])
        _store_y_and_stats(y, y_ref, ps_ref, m_real, tm)
    return kernel


def _make_first1_kernel(m_real, tm, mdt):
    def kernel(x_ref, w_ref, b_ref, y_ref, ps_ref):
        y = jnp.dot(x_ref[...].astype(mdt), w_ref[...],
                    preferred_element_type=jnp.float32) + b_ref[...]
        _store_y_and_stats(y, y_ref, ps_ref, m_real, tm)
    return kernel


def _make_mid_kernel(m_real, tm, mdt):
    def kernel(x_ref, stats_ref, g_ref, bt_ref, w_ref, b_ref, y_ref, ps_ref):
        xr = _bn_relu(x_ref[...], stats_ref[...], g_ref[...], bt_ref[...]).astype(mdt)
        y = jnp.dot(xr, w_ref[...], preferred_element_type=jnp.float32) + b_ref[...]
        _store_y_and_stats(y, y_ref, ps_ref, m_real, tm)
    return kernel


def _make_final_kernel():
    def kernel(x_ref, stats_ref, g_ref, bt_ref, out_ref):
        out_ref[...] = _bn_relu(x_ref[...], stats_ref[...], g_ref[...], bt_ref[...])
    return kernel


def _mlp_forward(tiled_first, params_p, m_real, tm, mp, matmul_dtype):
    num_tiles = mp // tm
    mdt = matmul_dtype

    def call(kernel, tiled_inputs, full_inputs, cout_p, flops, byt, want_stats=True):
        in_specs = ([pl.BlockSpec((tm, a.shape[1]), lambda m: (m, 0))
                     for a in tiled_inputs]
                    + [pl.BlockSpec(a.shape, lambda m: (0, 0)) for a in full_inputs])
        if want_stats:
            out_shape = (jax.ShapeDtypeStruct((mp, cout_p), jnp.float32),
                         jax.ShapeDtypeStruct((num_tiles, 2, cout_p), jnp.float32))
            out_specs = (pl.BlockSpec((tm, cout_p), lambda m: (m, 0)),
                         pl.BlockSpec((1, 2, cout_p), lambda m: (m, 0, 0)))
        else:
            out_shape = jax.ShapeDtypeStruct((mp, cout_p), jnp.float32)
            out_specs = pl.BlockSpec((tm, cout_p), lambda m: (m, 0))
        return pl.pallas_call(
            kernel, out_shape=out_shape, grid=(num_tiles,),
            in_specs=in_specs, out_specs=out_specs,
            compiler_params=pltpu.CompilerParams(
                dimension_semantics=("parallel",), vmem_limit_bytes=_VMEM_LIMIT),
            cost_estimate=pl.CostEstimate(flops=flops, transcendentals=0,
                                          bytes_accessed=byt),
        )(*tiled_inputs, *full_inputs)

    def stats_of(ps):
        tot = jnp.sum(ps, axis=0)                        # [2, Cp]
        mean = tot[0] / float(m_real)
        var = jnp.maximum(tot[1] / float(m_real) - mean * mean, 0.0)
        return jnp.stack([mean, var], axis=0)            # [2, Cp]

    # -- layer 0: matmul + bias (+ fused concat) + partial BN stats --
    L0 = params_p[0]
    if len(tiled_first) == 2:
        c0p = L0['wa'].shape[1]
        kern = _make_first2_kernel(m_real, tm, mdt)
        fulls = [L0['wa'].astype(mdt), L0['wb'].astype(mdt), L0['b']]
        k_in = tiled_first[0].shape[1] + tiled_first[1].shape[1]
    else:
        c0p = L0['w'].shape[1]
        kern = _make_first1_kernel(m_real, tm, mdt)
        fulls = [L0['w'].astype(mdt), L0['b']]
        k_in = tiled_first[0].shape[1]
    flops = 2 * mp * k_in * c0p
    byt = 4 * (mp * (k_in + c0p) + k_in * c0p)
    y, ps = call(kern, tiled_first, fulls, c0p, flops, byt)
    stats = stats_of(ps)
    g, bt = L0['g'], L0['bt']

    # -- layers 1..L-1: normalize prev (global stats) + ReLU + matmul --
    for i in range(1, len(params_p)):
        Li = params_p[i]
        cin_p, cout_p = Li['w'].shape
        kern = _make_mid_kernel(m_real, tm, mdt)
        flops = 2 * mp * cin_p * cout_p
        byt = 4 * (mp * (cin_p + cout_p) + cin_p * cout_p)
        y, ps = call(kern, [y], [stats, g, bt, Li['w'].astype(mdt), Li['b']],
                     cout_p, flops, byt)
        stats = stats_of(ps)
        g, bt = Li['g'], Li['bt']

    # -- final pass: normalize + ReLU of last layer --
    clp = y.shape[1]
    out = call(_make_final_kernel(), [y], [stats, g, bt], clp,
               flops=4 * mp * clp, byt=8 * mp * clp, want_stats=False)
    return out


def _pad_params(params, d1, d2, d1p, d2p, has_p1):
    padded = []
    for li, (w, b, g, bt) in enumerate(params):
        cin, cout = w.shape
        coutp = _round_up(cout, _LANE)
        entry = {'b': jnp.pad(b, ((0, 0), (0, coutp - cout))),
                 'g': jnp.pad(g, ((0, 0), (0, coutp - cout))),
                 'bt': jnp.pad(bt, ((0, 0), (0, coutp - cout)))}
        if li == 0 and has_p1:
            entry['wa'] = jnp.pad(w[:d1], ((0, d1p - d1), (0, coutp - cout)))
            entry['wb'] = jnp.pad(w[d1:], ((0, d2p - d2), (0, coutp - cout)))
        elif li == 0:
            entry['w'] = jnp.pad(w, ((0, d2p - d2), (0, coutp - cout)))
        else:
            cinp = _round_up(cin, _LANE)
            entry['w'] = jnp.pad(w, ((0, cinp - cin), (0, coutp - cout)))
        padded.append(entry)
    return padded


# --------------------------------------------------------------------------- #
# Public wrapper (PyTorch NCL layout in / out).
# --------------------------------------------------------------------------- #
def pointnet_fp_forward(xyz1, xyz2, points1, points2, params,
                        matmul_dtype=jnp.float32):
    """xyz1:[B,C,N], xyz2:[B,C,S], points1:[B,D1,N] or None, points2:[B,D2,S]."""
    B, C, N = xyz1.shape
    S = xyz2.shape[2]
    D2 = points2.shape[1]
    D1 = points1.shape[1] if points1 is not None else 0
    c_last = params[-1][0].shape[1]

    D2p = _round_up(D2, _LANE)                      # lane-dense feature widths
    D1p = _round_up(D1, _LANE) if points1 is not None else 0

    pts2_t = jnp.transpose(points2, (0, 2, 1)).astype(jnp.float32)        # [B,S,D2]
    pts2_p = jnp.pad(pts2_t, ((0, 0), (0, 0), (0, D2p - D2)))             # [B,S,D2p]

    if S == 1:
        interp = jnp.broadcast_to(pts2_p, (B, N, D2p))                    # repeat
    else:
        TN = 256 if N >= 256 else _round_up(N, 8)
        Np = _round_up(N, TN)
        xyz1_t = jnp.transpose(xyz1, (0, 2, 1)).astype(jnp.float32)
        xyz2_t = jnp.transpose(xyz2, (0, 2, 1)).astype(jnp.float32)
        xyz1_p = jnp.pad(xyz1_t, ((0, 0), (0, Np - N), (0, 0)))
        # augmented coordinates so that d = a_aug @ b_aug^T (expanded sq-distance);
        # contraction dim padded to 8 for clean layout.
        ca = _round_up(C + 2, 8)
        sq1 = jnp.sum(xyz1_p * xyz1_p, axis=-1, keepdims=True)
        sq2 = jnp.sum(xyz2_t * xyz2_t, axis=-1, keepdims=True)
        a_aug = jnp.concatenate(
            [xyz1_p, jnp.ones_like(sq1), sq1,
             jnp.zeros((B, Np, ca - C - 2), jnp.float32)], axis=-1)
        b_aug = jnp.concatenate(
            [-2.0 * xyz2_t, sq2, jnp.ones_like(sq2),
             jnp.zeros((B, S, ca - C - 2), jnp.float32)], axis=-1)
        interp = _interpolate(a_aug, b_aug, pts2_p, TN)[:, :N, :]         # [B,N,D2p]

    # flatten to M = B*N rows, pad rows to a multiple of the M tile.
    M = B * N
    TM = 256 if M >= 256 else _round_up(M, 8)
    Mp = _round_up(M, TM)

    it_flat = jnp.pad(interp.reshape(M, D2p), ((0, Mp - M), (0, 0)))
    tiled_first = [it_flat]
    if points1 is not None:
        p1_t = jnp.transpose(points1, (0, 2, 1)).astype(jnp.float32)      # [B,N,D1]
        p1_flat = jnp.pad(p1_t.reshape(M, D1), ((0, Mp - M), (0, D1p - D1)))
        tiled_first = [p1_flat, it_flat]

    params_p = _pad_params(params, D1, D2, D1p, D2p, points1 is not None)
    out_p = _mlp_forward(tiled_first, params_p, M, TM, Mp, matmul_dtype)  # [Mp,CLp]

    out = out_p[:M, :c_last].reshape(B, N, c_last)
    return jnp.transpose(out, (0, 2, 1))                                  # [B,D',N]


# --------------------------------------------------------------------------- #
# Deterministic parameter init (Conv1d weight stored transposed [Cin, Cout]).
# --------------------------------------------------------------------------- #
def init_params(key, in_channel, mlp):
    params = []
    last = in_channel
    for out_c in mlp:
        key, k1, k2 = jax.random.split(key, 3)
        w = jax.random.normal(k1, (last, out_c), jnp.float32) * 0.1
        b = jax.random.normal(k2, (1, out_c), jnp.float32) * 0.1
        gamma = jnp.ones((1, out_c), jnp.float32)   # BN defaults
        beta = jnp.zeros((1, out_c), jnp.float32)
        params.append((w, b, gamma, beta))
        last = out_c
    return params


# --------------------------------------------------------------------------- #
# Pure-JAX reference (mirrors the PyTorch forward) for a sanity check.
# --------------------------------------------------------------------------- #
def reference_forward(xyz1, xyz2, points1, points2, params):
    xyz1_t = jnp.transpose(xyz1, (0, 2, 1))
    xyz2_t = jnp.transpose(xyz2, (0, 2, 1))
    pts2_t = jnp.transpose(points2, (0, 2, 1))
    B, N, _ = xyz1_t.shape
    S = xyz2_t.shape[1]
    if S == 1:
        interp = jnp.broadcast_to(pts2_t, (B, N, pts2_t.shape[-1]))
    else:
        d = (-2.0 * jnp.einsum('bnc,bsc->bns', xyz1_t, xyz2_t)
             + jnp.sum(xyz1_t ** 2, -1)[:, :, None]
             + jnp.sum(xyz2_t ** 2, -1)[:, None, :])
        idx = jnp.argsort(d, axis=-1)[:, :, :3]
        dsel = jnp.maximum(jnp.take_along_axis(d, idx, axis=-1), 1e-10)
        w = 1.0 / dsel
        w = w / jnp.sum(w, -1, keepdims=True)
        gathered = jnp.take_along_axis(pts2_t[:, None, :, :], idx[..., None], axis=2)
        interp = jnp.sum(gathered * w[..., None], axis=2)
    if points1 is not None:
        feats = jnp.concatenate([jnp.transpose(points1, (0, 2, 1)), interp], -1)
    else:
        feats = interp
    x = feats.reshape(B * N, -1)
    for (w_, b_, g_, bt_) in params:
        y = x @ w_ + b_
        mean = jnp.mean(y, 0, keepdims=True)
        var = jnp.mean((y - mean) ** 2, 0, keepdims=True)
        y = (y - mean) * lax.rsqrt(var + _BN_EPS) * g_ + bt_
        x = jnp.maximum(y, 0.0)
    return x.reshape(B, N, -1).transpose(0, 2, 1)


if __name__ == "__main__":
    key = jax.random.PRNGKey(0)
    B, C, N, S = 2, 3, 16, 8
    D1, D2 = 6, 8
    mlp = [32, 16]
    in_channel = D1 + D2

    kx1, kx2, kp1, kp2, kp = jax.random.split(key, 5)
    xyz1 = jax.random.normal(kx1, (B, C, N), jnp.float32)
    xyz2 = jax.random.normal(kx2, (B, C, S), jnp.float32)
    points1 = jax.random.normal(kp1, (B, D1, N), jnp.float32)
    points2 = jax.random.normal(kp2, (B, D2, S), jnp.float32)
    params = init_params(kp, in_channel, mlp)

    # f32 path (reference-accurate)
    out = jax.block_until_ready(
        pointnet_fp_forward(xyz1, xyz2, points1, points2, params))
    ref = reference_forward(xyz1, xyz2, points1, points2, params)
    assert out.shape == (B, mlp[-1], N), out.shape
    err = float(jnp.max(jnp.abs(out - ref)))
    assert err < 2e-3, f"max abs err {err}"

    # bf16-MXU path (v6e/v7x throughput mode); accumulation & BN stay f32.
    out_bf16 = jax.block_until_ready(
        pointnet_fp_forward(xyz1, xyz2, points1, points2, params,
                            matmul_dtype=jnp.bfloat16))
    err_bf16 = float(jnp.max(jnp.abs(out_bf16 - ref)))
    assert err_bf16 < 1e-1, f"bf16 max abs err {err_bf16}"

    # points1 = None branch
    params_no_p1 = init_params(kp, D2, mlp)
    out2 = jax.block_until_ready(
        pointnet_fp_forward(xyz1, xyz2, None, points2, params_no_p1))
    ref2 = reference_forward(xyz1, xyz2, None, points2, params_no_p1)
    assert float(jnp.max(jnp.abs(out2 - ref2))) < 2e-3

    print("KERNEL_OK")
</pallas_src>

<mosaic_0001>
module attributes {stable_mosaic.version = 11 : i64} {
  func.func @_interp_kernel(%arg0: i32, %arg1: i32, %arg2: memref<1x16x8xf32, #tpu.memory_space<vmem>>, %arg3: memref<1x8x8xf32, #tpu.memory_space<vmem>>, %arg4: memref<1x8x128xf32, #tpu.memory_space<vmem>>, %arg5: memref<1x16x128xf32, #tpu.memory_space<vmem>>) attributes {dimension_semantics = [#tpu.dimension_semantics<parallel>, #tpu.dimension_semantics<parallel>], iteration_bounds = array<i64: 2, 1>, scalar_prefetch = 0 : i64, scratch_operands = 0 : i64, tpu.core_type = #tpu.core_type<tc>, window_params = [{transform_indices = @transform_0, window_bounds = array<i64: 1, 16, 8>}, {transform_indices = @transform_1, window_bounds = array<i64: 1, 8, 8>}, {transform_indices = @transform_2, window_bounds = array<i64: 1, 8, 128>}, {transform_indices = @transform_3, window_bounds = array<i64: 1, 16, 128>}]} {
    %c0 = arith.constant 0 : index
    %c0_0 = arith.constant 0 : index
    %c0_1 = arith.constant 0 : index
    %0 = vector.load %arg2[%c0, %c0_0, %c0_1] : memref<1x16x8xf32, #tpu.memory_space<vmem>>, vector<1x16x8xf32>
    %1 = vector.shape_cast %0 : vector<1x16x8xf32> to vector<16x8xf32>
    %c0_2 = arith.constant 0 : index
    %c0_3 = arith.constant 0 : index
    %c0_4 = arith.constant 0 : index
    %2 = vector.load %arg3[%c0_2, %c0_3, %c0_4] : memref<1x8x8xf32, #tpu.memory_space<vmem>>, vector<1x8x8xf32>
    %3 = vector.shape_cast %2 : vector<1x8x8xf32> to vector<8x8xf32>
    %c0_5 = arith.constant 0 : index
    %c0_6 = arith.constant 0 : index
    %c0_7 = arith.constant 0 : index
    %4 = vector.load %arg4[%c0_5, %c0_6, %c0_7] : memref<1x8x128xf32, #tpu.memory_space<vmem>>, vector<1x8x128xf32>
    %5 = vector.shape_cast %4 : vector<1x8x128xf32> to vector<8x128xf32>
    %cst = arith.constant dense<0.000000e+00> : vector<16x8xf32>
    %6 = tpu.matmul %1, %3, %cst {dimension_numbers = #tpu.dot_dimension_numbers<[1], [1], [0], [0], [0, 0, 1, 0], [], []>} : vector<16x8xf32>, vector<8x8xf32>, vector<16x8xf32> -> vector<16x8xf32>
    %7 = tpu.iota {dimensions = array<i32: 1>} : vector<16x8xi32>
    %cst_8 = arith.constant 0.000000e+00 : f32
    %8 = vector.broadcast %cst_8 : f32 to vector<16x8xf32>
    %cst_9 = arith.constant 0.000000e+00 : f32
    %9 = vector.broadcast %cst_9 : f32 to vector<16x1xf32>
    %cst_10 = arith.constant dense<0x7F800000> : vector<16xf32>
    %10 = vector.multi_reduction <minimumf>, %6, %cst_10 [1] : vector<16x8xf32> to vector<16xf32>
    %11 = vector.shape_cast %10 : vector<16xf32> to vector<16x1xf32>
    %12 = vector.broadcast %11 : vector<16x1xf32> to vector<16x8xf32>
    %13 = arith.cmpf ole, %6, %12 : vector<16x8xf32>
    %c1073741824_i32 = arith.constant 1073741824 : i32
    %14 = vector.broadcast %c1073741824_i32 : i32 to vector<16x8xi32>
    %15 = arith.select %13, %7, %14 : vector<16x8xi1>, vector<16x8xi32>
    %cst_11 = arith.constant dense<2147483647> : vector<16xi32>
    %16 = vector.multi_reduction <minsi>, %15, %cst_11 [1] : vector<16x8xi32> to vector<16xi32>
    %17 = vector.shape_cast %16 : vector<16xi32> to vector<16x1xi32>
    %18 = vector.broadcast %17 : vector<16x1xi32> to vector<16x8xi32>
    %19 = arith.cmpi eq, %7, %18 : vector<16x8xi32>
    %20 = arith.extui %19 : vector<16x8xi1> to vector<16x8xi32>
    %21 = arith.sitofp %20 : vector<16x8xi32> to vector<16x8xf32>
    %cst_12 = arith.constant 1.000000e-10 : f32
    %22 = vector.broadcast %cst_12 : f32 to vector<16x1xf32>
    %23 = arith.maximumf %11, %22 : vector<16x1xf32>
    %cst_13 = arith.constant 1.000000e+00 : f32
    %24 = vector.broadcast %cst_13 : f32 to vector<16x1xf32>
    %25 = arith.divf %24, %23 : vector<16x1xf32>
    %26 = vector.broadcast %25 : vector<16x1xf32> to vector<16x8xf32>
    %27 = arith.mulf %21, %26 : vector<16x8xf32>
    %28 = arith.addf %8, %27 : vector<16x8xf32>
    %29 = arith.addf %9, %25 : vector<16x1xf32>
    %cst_14 = arith.constant 0.000000e+00 : f32
    %30 = vector.broadcast %cst_14 : f32 to vector<16x8xf32>
    %31 = arith.cmpf ogt, %21, %30 : vector<16x8xf32>
    %cst_15 = arith.constant 3.000000e+38 : f32
    %32 = vector.broadcast %cst_15 : f32 to vector<16x8xf32>
    %33 = arith.select %31, %32, %6 : vector<16x8xi1>, vector<16x8xf32>
    %cst_16 = arith.constant dense<0x7F800000> : vector<16xf32>
    %34 = vector.multi_reduction <minimumf>, %33, %cst_16 [1] : vector<16x8xf32> to vector<16xf32>
    %35 = vector.shape_cast %34 : vector<16xf32> to vector<16x1xf32>
    %36 = vector.broadcast %35 : vector<16x1xf32> to vector<16x8xf32>
    %37 = arith.cmpf ole, %33, %36 : vector<16x8xf32>
    %c1073741824_i32_17 = arith.constant 1073741824 : i32
    %38 = vector.broadcast %c1073741824_i32_17 : i32 to vector<16x8xi32>
    %39 = arith.select %37, %7, %38 : vector<16x8xi1>, vector<16x8xi32>
    %cst_18 = arith.constant dense<2147483647> : vector<16xi32>
    %40 = vector.multi_reduction <minsi>, %39, %cst_18 [1] : vector<16x8xi32> to vector<16xi32>
    %41 = vector.shape_cast %40 : vector<16xi32> to vector<16x1xi32>
    %42 = vector.broadcast %41 : vector<16x1xi32> to vector<16x8xi32>
    %43 = arith.cmpi eq, %7, %42 : vector<16x8xi32>
    %44 = arith.extui %43 : vector<16x8xi1> to vector<16x8xi32>
    %45 = arith.sitofp %44 : vector<16x8xi32> to vector<16x8xf32>
    %cst_19 = arith.constant 1.000000e-10 : f32
    %46 = vector.broadcast %cst_19 : f32 to vector<16x1xf32>
    %47 = arith.maximumf %35, %46 : vector<16x1xf32>
    %cst_20 = arith.constant 1.000000e+00 : f32
    %48 = vector.broadcast %cst_20 : f32 to vector<16x1xf32>
    %49 = arith.divf %48, %47 : vector<16x1xf32>
    %50 = vector.broadcast %49 : vector<16x1xf32> to vector<16x8xf32>
    %51 = arith.mulf %45, %50 : vector<16x8xf32>
    %52 = arith.addf %28, %51 : vector<16x8xf32>
    %53 = arith.addf %29, %49 : vector<16x1xf32>
    %cst_21 = arith.constant 0.000000e+00 : f32
    %54 = vector.broadcast %cst_21 : f32 to vector<16x8xf32>
    %55 = arith.cmpf ogt, %45, %54 : vector<16x8xf32>
    %cst_22 = arith.constant 3.000000e+38 : f32
    %56 = vector.broadcast %cst_22 : f32 to vector<16x8xf32>
    %57 = arith.select %55, %56, %33 : vector<16x8xi1>, vector<16x8xf32>
    %cst_23 = arith.constant dense<0x7F800000> : vector<16xf32>
    %58 = vector.multi_reduction <minimumf>, %57, %cst_23 [1] : vector<16x8xf32> to vector<16xf32>
    %59 = vector.shape_cast %58 : vector<16xf32> to vector<16x1xf32>
    %60 = vector.broadcast %59 : vector<16x1xf32> to vector<16x8xf32>
    %61 = arith.cmpf ole, %57, %60 : vector<16x8xf32>
    %c1073741824_i32_24 = arith.constant 1073741824 : i32
    %62 = vector.broadcast %c1073741824_i32_24 : i32 to vector<16x8xi32>
    %63 = arith.select %61, %7, %62 : vector<16x8xi1>, vector<16x8xi32>
    %cst_25 = arith.constant dense<2147483647> : vector<16xi32>
    %64 = vector.multi_reduction <minsi>, %63, %cst_25 [1] : vector<16x8xi32> to vector<16xi32>
    %65 = vector.shape_cast %64 : vector<16xi32> to vector<16x1xi32>
    %66 = vector.broadcast %65 : vector<16x1xi32> to vector<16x8xi32>
    %67 = arith.cmpi eq, %7, %66 : vector<16x8xi32>
    %68 = arith.extui %67 : vector<16x8xi1> to vector<16x8xi32>
    %69 = arith.sitofp %68 : vector<16x8xi32> to vector<16x8xf32>
    %cst_26 = arith.constant 1.000000e-10 : f32
    %70 = vector.broadcast %cst_26 : f32 to vector<16x1xf32>
    %71 = arith.maximumf %59, %70 : vector<16x1xf32>
    %cst_27 = arith.constant 1.000000e+00 : f32
    %72 = vector.broadcast %cst_27 : f32 to vector<16x1xf32>
    %73 = arith.divf %72, %71 : vector<16x1xf32>
    %74 = vector.broadcast %73 : vector<16x1xf32> to vector<16x8xf32>
    %75 = arith.mulf %69, %74 : vector<16x8xf32>
    %76 = arith.addf %52, %75 : vector<16x8xf32>
    %77 = arith.addf %53, %73 : vector<16x1xf32>
    %cst_28 = arith.constant dense<0.000000e+00> : vector<16x128xf32>
    %78 = tpu.matmul %76, %5, %cst_28 {dimension_numbers = #tpu.dot_dimension_numbers<[1], [0], [0], [1], [0, 0, 1, 1], [], []>} : vector<16x8xf32>, vector<8x128xf32>, vector<16x128xf32> -> vector<16x128xf32>
    %cst_29 = arith.constant 1.000000e+00 : f32
    %79 = vector.broadcast %cst_29 : f32 to vector<16x1xf32>
    %80 = arith.divf %79, %77 : vector<16x1xf32>
    %81 = vector.broadcast %80 : vector<16x1xf32> to vector<16x128xf32>
    %82 = arith.mulf %78, %81 : vector<16x128xf32>
    %c0_30 = arith.constant 0 : index
    %c0_31 = arith.constant 0 : index
    %c0_32 = arith.constant 0 : index
    %83 = vector.load %arg5[%c0_30, %c0_31, %c0_32] : memref<1x16x128xf32, #tpu.memory_space<vmem>>, vector<1x16x128xf32>
    %84 = vector.shape_cast %83 : vector<1x16x128xf32> to vector<16x128xf32>
    %85 = vector.shape_cast %82 : vector<16x128xf32> to vector<1x16x128xf32>
    tpu.vector_store %arg5[%c0_30, %c0_31, %c0_32], %85 {strides = array<i32>} : memref<1x16x128xf32, #tpu.memory_space<vmem>>, vector<1x16x128xf32>,
    return
  }
  func.func @transform_0(%arg0: i32, %arg1: i32) -> (i32, i32, i32) {
    %c0_i32 = arith.constant 0 : i32
    %c0_i32_0 = arith.constant 0 : i32
    return %arg0, %arg1, %c0_i32 : i32, i32, i32
  }
  func.func @transform_1(%arg0: i32, %arg1: i32) -> (i32, i32, i32) {
    %c0_i32 = arith.constant 0 : i32
    %c0_i32_0 = arith.constant 0 : i32
    %c0_i32_1 = arith.constant 0 : i32
    return %arg0, %c0_i32, %c0_i32_0 : i32, i32, i32
  }
  func.func @transform_2(%arg0: i32, %arg1: i32) -> (i32, i32, i32) {
    %c0_i32 = arith.constant 0 : i32
    %c0_i32_0 = arith.constant 0 : i32
    %c0_i32_1 = arith.constant 0 : i32
    return %arg0, %c0_i32, %c0_i32_0 : i32, i32, i32
  }
  func.func @transform_3(%arg0: i32, %arg1: i32) -> (i32, i32, i32) {
    %c0_i32 = arith.constant 0 : i32
    %c0_i32_0 = arith.constant 0 : i32
    return %arg0, %arg1, %c0_i32 : i32, i32, i32
  }
}

</mosaic_0001>

<bundles_post_ra>
// kernel: tpu_custom_call.1
= control target key start
LH: loop header
LB: loop body
LE: loop exit
PB: predicated region body
PF: predicated region fallthrough
CT: control target
= control target key end

     0   :  { %8 = vsyncpa [#allocation3], 0  ;;  %s1134_s0 = inlined_call_operand.vmem [shape: f32[2,16,8], index: 0, kind: input, shape index: {}]   ;;  %s1135_s1 = inlined_call_operand.vmem [shape: f32[2,8,8], index: 1, kind: input, shape index: {}]   ;;  %s1136_s2 = inlined_call_operand.vmem [shape: f32[2,8,128], index: 2, kind: input, shape index: {}]   ;;  %s1137_s3 = inlined_call_operand.hbm [shape: f32[2,16,128], index: 3, kind: output, shape index: {}]  }
   0x1   :  { %10 = vsyncpa [#allocation3 + $0x1], 0  ;;  %s935_s12 = smov 0   ;;  %s937_s13 = smov 0  }
   0x2   :  { %s939_s14 = smov 0   ;;  %s941_s15 = smov 0  }
   0x3   :  { %s943_s16 = smov 0   ;;  %s945_s17 = smov 0  }
   0x4 LB: > { %s715_s18 = sadd.s32 4294967295, %s909_s17   ;;  %s716_s19 = sadd.s32 4294967294, %s909_s17   ;;  %s909_s17 = sphi %s945_s17, %s16_s17   ;;  %s905_s16 = sphi %s943_s16, %s1144_s16   ;;  %s901_s15 = sphi %s941_s15, %s1143_s15   ;;  %s897_s14 = sphi %s939_s14, %s1142_s14   ;;  %s893_s13 = sphi %s937_s13, %s1141_s13   ;;  %s889_s12 = sphi %s935_s12, %s1140_s12  }
   0x5   : > { %s28_s20 = sadd.s32 1, %s905_s16  ;;  %s117_s21 = sadd.s32 1, %s897_s14 }
   0x6   : > { %p30_p0 = scmp.ge.s32.totalorder %s28_s20, 2  ;;  %p127_p1 = scmp.ne.s32.totalorder %s897_s14, %s893_s13 }
   0x7   : > { %p128_p2 = scmp.eq.s32.totalorder %s715_s18, 1  ;;  %p133_p3 = scmp.ne.s32.totalorder %s893_s13, %s889_s12 }
   0x8   : > { %s1146_s20 = smov (%p30_p0, %s28_s20), 0  ;;  %p134_p5 = scmp.eq.s32.totalorder %s716_s19, 1 }
   0x9   : > { %p975_p4 = por %p128_p2, %p127_p1  ;;  %s112_s23 = ssub.s32 %s905_s16, %s1146_s20 }
   0xa   : > { %p719_p6 = scmp.ge.s32.totalorder %s909_s17, 1  ;;  %p115_p7 = scmp.eq.s32.totalorder %s112_s23, 0 }
   0xb   : > { %p982_p8 = por %p134_p5, %p133_p3  ;;  %p179_p9 = scmp.lt.s32.totalorder %s909_s17, 3 }
   0xc   : > { %s988_s25 = scalar_select %p115_p7, %s897_s14, %s117_s21  }
   0xd   : > { %p180_p10 = pnand %p719_p6, %p179_p9 }
   0xe   : > { %p216_p11 = scmp.lt.s32.totalorder (!%p180_p10), %s901_s15, 1  ;;  %s212_s11 = sand.u32 (!%p180_p10), 1, %s893_s13  }
   0xf   : > { %183 = sbr.rel (%p180_p10) target bundleno = 1737 (0x6c9), region = 32  ;;  %s720_s18 = sshll.u32 (!%p180_p10), %s212_s11, 4 }
  0x10   : > { %s214_s19 = scalar_lea.vmem (!%p180_p10), [#allocation2], %s720_s18  ;;  %s742_s23 = sshll.u32 (!%p180_p10), %s901_s15, 8 }
  0x11   : > { %s612_s21 = sshll.u32 (!%p180_p10), %s214_s19, 4  ;;  %s1089_s29 = scalar_lea.sflag (!%p180_p10), [#allocation3], %s212_s11  ;;  %s1082_s21 = int_to_ptr.vmem [resolvable:$true] %s612_s21 }
  0x12   : > { %s912_s30 = smov (!%p180_p10), [#allocation2]  }
  0x14   : > { %s992_s26 = scalar_select %p216_p11, %s901_s15, 1  ;;  %vm238_vm0 = vcmask 64512   ;;  %v323_v7 = vlaneseq  ;;  %v911_v36 = vmov 0.0  }
  0x15   : > { %s833_s15 = scalar_lea.vmem %s1082_s21, 256 }
  0x16   : > { %s723_s27 = sshll.u32 %s992_s26, 3  ;;  %s741_s28 = sshll.u32 %s992_s26, 4  ;;  %v1010_v8 = vand.u32 127, %v323_v7 }
  0x17   : > { %s228_s4 = scalar_lea.vmem %s1135_s1, %s723_s27  ;;  %s223_s7 = scalar_lea.vmem %s1134_s0, %s741_s28 }
  0x18   : > { %v236_v0 = vld [vmem:[%s228_s4] sm:$0xff]  ;;  %v235_v2 = vld [vmem:[%s223_s7 + $0x8] sm:$0xff]  ;;  %s232_s10 = scalar_lea.vmem %s1136_s2, %s723_s27  ;;  %s1087_s28 = scalar_lea.hbm %s1137_s3, %s742_s23 }
  0x19   : > { %v234_v1 = vld [vmem:[%s223_s7] sm:$0xff]  ;;  %749 = vmatprep.subr.msk.mxu0 %vm238_vm0, %v236_v0  ;;  %p834_p12 = scmp.ne.s32.totalorder %s1082_s21, %s833_s15  ;;  %s837_s4 = sshll.u32 %s912_s30, 4  ;;  %s838_s4 = int_to_ptr.vmem [resolvable:$false] %s837_s4 }
  0x1a   : > { %751 = vmatprep.mubr.msk.f32.mxu0 %vm238_vm0, %v234_v1  ;;  %750 = vmatpush3.xpose.msk.msra.mxu0 %vm238_vm0, %v236_v0  ;;  %s839_s5 = scalar_lea.vmem %s838_s4, 512  ;;  %p840_p1 = scmp.lt.s32.totalorder %s1082_s21, %s838_s4 }
  0x1b   : > { %p835_p13 = pnand %p834_p12, %p975_p4  ;;  %p841_p2 = scmp.lt.s32.totalorder %s839_s5, %s833_s15 }
  0x1d   : > { %752 = vmatmul.mubr.msk.f32.vlgmr.msra.gmra.mxu0 %vm238_vm0, %v235_v2  ;;  %p836_p0 = pneg %p835_p13  ;;  %p842_p3 = por %p841_p2, %p840_p1 }
  0x1f   : > { %p843_p5 = pnand %p842_p3, %p836_p0 }
  0xdd   : > { %v753_v3 = vpop.f32.mrf.mxu0 }
  0xde   : > { %v328_v6 = vsel %vm238_vm0, %v753_v3, inf }
  0xdf   : > { %v314_v4 = vpop.f32.mrf.mxu0 }
  0xe0   : > { %v325_v5 = vsel %vm238_vm0, %v314_v4, inf }
  0xe1   : > { %326 = vmin.xlane.f32.xlu0 %v325_v5 }
  0xe5   : > { %329 = vmin.xlane.f32.xlu0 %v328_v6 }
 0x16a   : > { %v1012_v9 = vpop.xlane.xlu0 %326 }
 0x16b   : > { %vm331_vm1 = vcmp.le.f32.partialorder %v314_v4, %v1012_v9  ;;  %v371_v62 = vmax.f32 %v1012_v9, 1e-10 }
 0x16c   : > { %v333_v10 = vsel %vm331_vm1, %v1010_v8, 1073741824 }
 0x16d   : > { %v335_v11 = vsel %vm238_vm0, %v333_v10, 2147483647  ;;  %817 = vrcp.f32 %v371_v62 }
 0x16e   : > { %v1017_v12 = vpop.xlane.xlu0 %329  ;;  %v337_v13 = vshra.s32 %v335_v11, 16  ;;  %v336_v19 = vand.u32 65535, %v335_v11 }
 0x16f   : > { %vm332_vm2 = vcmp.le.f32.partialorder %v753_v3, %v1017_v12  ;;  %v372_v0 = vmax.f32 %v1017_v12, 1e-10 }
 0x170   : > { %v334_v14 = vsel %vm332_vm2, %v1010_v8, 1073741824  ;;  %v339_v15 = vcvt.s32.f32 %v337_v13  ;;  %v338_v21 = vcvt.s32.f32 %v336_v19 }
 0x171   : > { %v350_v16 = vsel %vm238_vm0, %v334_v14, 2147483647 }
 0x172   : > { %340 = vmin.xlane.f32.xlu1 %v339_v15  ;;  %v352_v17 = vshra.s32 %v350_v16, 16  ;;  %v351_v22 = vand.u32 65535, %v350_v16 }
 0x174   : > { %v354_v18 = vcvt.s32.f32 %v352_v17  ;;  %v353_v25 = vcvt.s32.f32 %v351_v22 }
 0x176   : > { %355 = vmin.xlane.f32.xlu1 %v354_v18 }
 0x17a   : > { %v1041_v11 = vpop.eup %817 }
 0x1fb   : > { %v341_v20 = vpop.xlane.xlu1 %340 }
 0x1fc   : > { %vm342_vm3 = vcmp.eq.f32.partialorder %v339_v15, %v341_v20  ;;  %v347_v27 = vcvt.f32.s32 %v341_v20 }
 0x1fd   : > { %v343_v23 = vsel %vm342_vm3, %v338_v21, inf }
 0x1fe   : > { %344 = vmin.xlane.f32.xlu0 %v343_v23  ;;  %v348_v29 = vshll.u32 %v347_v27, 16 }
 0x1ff   : > { %v356_v24 = vpop.xlane.xlu1 %355 }
 0x200   : > { %vm357_vm4 = vcmp.eq.f32.partialorder %v354_v18, %v356_v24  ;;  %v362_v30 = vcvt.f32.s32 %v356_v24 }
 0x201   : > { %v358_v26 = vsel %vm357_vm4, %v353_v25, inf }
 0x202   : > { %359 = vmin.xlane.f32.xlu1 %v358_v26  ;;  %v363_v34 = vshll.u32 %v362_v30, 16 }
 0x287   : > { %v345_v28 = vpop.xlane.xlu0 %344 }
 0x288   : > { %v346_v31 = vcvt.f32.s32 %v345_v28 }
 0x28a   : > { %v349_v32 = vadd.s32 %v348_v29, %v346_v31 }
 0x28b   : > { %v360_v33 = vpop.xlane.xlu1 %359 }
 0x28c   : > { %vm365_vm5 = vcmp.eq.s32.totalorder %v1010_v8, %v349_v32  ;;  %v361_v35 = vcvt.f32.s32 %v360_v33 }
 0x28d   : > { %v728_v37 = vsel %vm365_vm5, 1.0, %v911_v36 }
 0x28e   : > { %v364_v38 = vadd.s32 %v363_v34, %v361_v35  ;;  %vm383_vm6 = vcmp.gt.f32.partialorder %v728_v37, 0.0  ;;  %v377_v17 = vmul.f32 %v1041_v11, %v728_v37 }
 0x28f   : > { %v385_v39 = vsel %vm383_vm6, 3e+38, %v314_v4 }
 0x290   : > { %vm366_vm7 = vcmp.eq.s32.totalorder %v1010_v8, %v364_v38  ;;  %v387_v40 = vsel %vm238_vm0, %v385_v39, inf }
 0x291   : > { %388 = vmin.xlane.f32.xlu0 %v387_v40  ;;  %v1027_v41 = vsel %vm366_vm7, 1.0, %v911_v36 }
 0x292   : > { %vm384_vm8 = vcmp.gt.f32.partialorder %v1027_v41, 0.0 }
 0x293   : > { %v1030_v42 = vsel %vm384_vm8, 3e+38, %v753_v3 }
 0x294   : > { %v390_v43 = vsel %vm238_vm0, %v1030_v42, inf }
 0x295   : > { %391 = vmin.xlane.f32.xlu1 %v390_v43 }
 0x31a   : > { %v389_v44 = vpop.xlane.xlu0 %388 }
 0x31b   : > { %vm393_vm9 = vcmp.le.f32.partialorder %v385_v39, %v389_v44  ;;  %v433_v63 = vmax.f32 %v389_v44, 1e-10 }
 0x31c   : > { %v395_v45 = vsel %vm393_vm9, %v1010_v8, 1073741824 }
 0x31d   : > { %v397_v46 = vsel %vm238_vm0, %v395_v45, 2147483647  ;;  %819 = vrcp.f32 %v433_v63 }
 0x31e   : > { %v392_v47 = vpop.xlane.xlu1 %391  ;;  %v399_v48 = vshra.s32 %v397_v46, 16  ;;  %v398_v54 = vand.u32 65535, %v397_v46  ;;  %821 = vrcp.f32 %v372_v0 }
 0x31f   : > { %vm394_vm10 = vcmp.le.f32.partialorder %v1030_v42, %v392_v47  ;;  %v434_v1 = vmax.f32 %v392_v47, 1e-10 }
 0x320   : > { %v396_v49 = vsel %vm394_vm10, %v1010_v8, 1073741824  ;;  %v401_v50 = vcvt.s32.f32 %v399_v48  ;;  %v400_v56 = vcvt.s32.f32 %v398_v54  ;;  %v237_v48 = vld [vmem:[%s232_s10] sm:$0xff] }
 0x321   : > { %v412_v51 = vsel %vm238_vm0, %v396_v49, 2147483647  ;;  %823 = vrcp.f32 %v434_v1  ;;  %754 = vmatprep.subr.mxu1 %v237_v48 }
 0x322   : > { %402 = vmin.xlane.f32.xlu0 %v401_v50  ;;  %v414_v52 = vshra.s32 %v412_v51, 16  ;;  %v413_v57 = vand.u32 65535, %v412_v51  ;;  %755 = vmatpush3.msra.mxu1 %v237_v48 }
 0x324   : > { %v416_v53 = vcvt.s32.f32 %v414_v52  ;;  %v415_v60 = vcvt.s32.f32 %v413_v57 }
 0x326   : > { %417 = vmin.xlane.f32.xlu1 %v416_v53 }
 0x32a   : > { %v1044_v9 = vpop.eup %819 }
 0x32b   : > { %v1049_v19 = vpop.eup %821 }
 0x32c   : > { %v378_v24 = vmul.f32 %v1049_v19, %v1027_v41 }
 0x32e   : > { %v1053_v22 = vpop.eup %823 }
 0x3ab   : > { %v403_v55 = vpop.xlane.xlu0 %402 }
 0x3ac   : > { %vm404_vm11 = vcmp.eq.f32.partialorder %v401_v50, %v403_v55  ;;  %v409_v2 = vcvt.f32.s32 %v403_v55 }
 0x3ad   : > { %v405_v58 = vsel %vm404_vm11, %v400_v56, inf }
 0x3ae   : > { %406 = vmin.xlane.f32.xlu0 %v405_v58  ;;  %v410_v4 = vshll.u32 %v409_v2, 16 }
 0x3af   : > { %v418_v59 = vpop.xlane.xlu1 %417 }
 0x3b0   : > { %vm419_vm12 = vcmp.eq.f32.partialorder %v416_v53, %v418_v59  ;;  %v424_v5 = vcvt.f32.s32 %v418_v59 }
 0x3b1   : > { %v420_v61 = vsel %vm419_vm12, %v415_v60, inf }
 0x3b2   : > { %421 = vmin.xlane.f32.xlu1 %v420_v61  ;;  %v425_v13 = vshll.u32 %v424_v5, 16  ;;  %v444_v5 = vadd.f32 %v1053_v22, %v1049_v19 }
 0x437   : > { %v407_v3 = vpop.xlane.xlu0 %406 }
 0x438   : > { %v408_v6 = vcvt.f32.s32 %v407_v3 }
 0x43a   : > { %v411_v7 = vadd.s32 %v410_v4, %v408_v6  ;;  %v443_v6 = vadd.f32 %v1044_v9, %v1041_v11 }
 0x43b   : > { %v422_v10 = vpop.xlane.xlu1 %421 }
 0x43c   : > { %v423_v14 = vcvt.f32.s32 %v422_v10  ;;  %vm427_vm13 = vcmp.eq.s32.totalorder %v1010_v8, %v411_v7 }
 0x43d   : > { %v730_v12 = vsel %vm427_vm13, 1.0, %v911_v36 }
 0x43e   : > { %v426_v15 = vadd.s32 %v425_v13, %v423_v14  ;;  %vm445_vm14 = vcmp.gt.f32.partialorder %v730_v12, 0.0  ;;  %v439_v16 = vmul.f32 %v1044_v9, %v730_v12 }
 0x43f   : > { %v447_v18 = vsel %vm445_vm14, 3e+38, %v385_v39 }
 0x440   : > { %v449_v20 = vsel %vm238_vm0, %v447_v18, inf  ;;  %vm428_vm15 = vcmp.eq.s32.totalorder %v1010_v8, %v426_v15  ;;  %v441_v21 = vadd.f32 %v439_v16, %v377_v17 }
 0x441   : > { %450 = vmin.xlane.f32.xlu0 %v449_v20  ;;  %v731_v23 = vsel %vm428_vm15, 1.0, %v911_v36 }
 0x442   : > { %vm446_vm1 = vcmp.gt.f32.partialorder %v731_v23, 0.0  ;;  %v440_v25 = vmul.f32 %v1053_v22, %v731_v23 }
 0x443   : > { %v448_v26 = vsel %vm446_vm1, 3e+38, %v1030_v42 }
 0x444   : > { %v452_v27 = vsel %vm238_vm0, %v448_v26, inf  ;;  %v442_v28 = vadd.f32 %v440_v25, %v378_v24 }
 0x445   : > { %453 = vmin.xlane.f32.xlu1 %v452_v27 }
 0x4ca   : > { %v451_v29 = vpop.xlane.xlu0 %450 }
 0x4cb   : > { %vm455_vm2 = vcmp.le.f32.partialorder %v447_v18, %v451_v29  ;;  %v495_v49 = vmax.f32 %v451_v29, 1e-10 }
 0x4cc   : > { %v457_v30 = vsel %vm455_vm2, %v1010_v8, 1073741824 }
 0x4cd   : > { %v459_v31 = vsel %vm238_vm0, %v457_v30, 2147483647  ;;  %825 = vrcp.f32 %v495_v49 }
 0x4ce   : > { %v454_v32 = vpop.xlane.xlu1 %453  ;;  %v461_v33 = vshra.s32 %v459_v31, 16  ;;  %v460_v40 = vand.u32 65535, %v459_v31 }
 0x4cf   : > { %vm456_vm3 = vcmp.le.f32.partialorder %v448_v26, %v454_v32  ;;  %v496_v50 = vmax.f32 %v454_v32, 1e-10 }
 0x4d0   : > { %v458_v34 = vsel %vm456_vm3, %v1010_v8, 1073741824  ;;  %v463_v35 = vcvt.s32.f32 %v461_v33  ;;  %v462_v42 = vcvt.s32.f32 %v460_v40 }
 0x4d1   : > { %v474_v37 = vsel %vm238_vm0, %v458_v34, 2147483647  ;;  %827 = vrcp.f32 %v496_v50 }
 0x4d2   : > { %464 = vmin.xlane.f32.xlu0 %v463_v35  ;;  %v476_v38 = vshra.s32 %v474_v37, 16  ;;  %v475_v43 = vand.u32 65535, %v474_v37 }
 0x4d4   : > { %v478_v39 = vcvt.s32.f32 %v476_v38  ;;  %v477_v46 = vcvt.s32.f32 %v475_v43 }
 0x4d6   : > { %479 = vmin.xlane.f32.xlu1 %v478_v39 }
 0x4da   : > { %v826_v60 = vpop.eup %825 }
 0x4db   : > { %v505_v10 = vadd.f32 %v826_v60, %v443_v6 }
 0x4de   : > { %v828_v1 = vpop.eup %827 }
 0x4df   : > { %v506_v7 = vadd.f32 %v828_v1, %v444_v5 }
 0x4e1   : > { %829 = vrcp.f32 %v506_v7 }
 0x4e2   : > { %831 = vrcp.f32 %v505_v10 }
 0x55b   : > { %v465_v41 = vpop.xlane.xlu0 %464 }
 0x55c   : > { %vm466_vm4 = vcmp.eq.f32.partialorder %v463_v35, %v465_v41  ;;  %v471_v51 = vcvt.f32.s32 %v465_v41 }
 0x55d   : > { %v467_v44 = vsel %vm466_vm4, %v462_v42, inf }
 0x55e   : > { %468 = vmin.xlane.f32.xlu0 %v467_v44  ;;  %v472_v53 = vshll.u32 %v471_v51, 16 }
 0x55f   : > { %v480_v45 = vpop.xlane.xlu1 %479 }
 0x560   : > { %vm481_vm5 = vcmp.eq.f32.partialorder %v478_v39, %v480_v45  ;;  %v486_v54 = vcvt.f32.s32 %v480_v45 }
 0x561   : > { %v482_v47 = vsel %vm481_vm5, %v477_v46, inf }
 0x562   : > { %483 = vmin.xlane.f32.xlu1 %v482_v47  ;;  %v487_v58 = vshll.u32 %v486_v54, 16 }
 0x5e7   : > { %v469_v52 = vpop.xlane.xlu0 %468 }
 0x5e8   : > { %v470_v55 = vcvt.f32.s32 %v469_v52 }
 0x5ea   : > { %v473_v56 = vadd.s32 %v472_v53, %v470_v55 }
 0x5eb   : > { %v484_v57 = vpop.xlane.xlu1 %483 }
 0x5ec   : > { %vm489_vm6 = vcmp.eq.s32.totalorder %v1010_v8, %v473_v56  ;;  %v485_v59 = vcvt.f32.s32 %v484_v57 }
 0x5ed   : > { %v732_v61 = vsel %vm489_vm6, 1.0, %v911_v36 }
 0x5ee   : > { %v488_v62 = vadd.s32 %v487_v58, %v485_v59  ;;  %v501_v63 = vmul.f32 %v826_v60, %v732_v61 }
 0x5f0   : > { %vm490_vm7 = vcmp.eq.s32.totalorder %v1010_v8, %v488_v62  ;;  %v503_v0 = vadd.f32 %v501_v63, %v441_v21  ;;  %v830_v8 = vpop.eup %829 }
 0x5f1   : > { %v733_v2 = vsel %vm490_vm7, 1.0, %v911_v36  ;;  %v832_v14 = vpop.eup %831 }
 0x5f2   : > { %v502_v3 = vmul.f32 %v828_v1, %v733_v2  ;;  %756 = vmatprep.mubr.msk.f32.mxu1 %vm238_vm0, %v503_v0 }
 0x5f4   : > { %v504_v4 = vadd.f32 %v502_v3, %v442_v28 }
 0x5f6   : > { %757 = vmatmul.mubr.msk.f32.vlgmr.msra.gmra.mxu1 %vm238_vm0, %v504_v4 }
 0x6b6   : > { %v758_v36 = vpop.f32.mrf.mxu1 }
 0x6b7   : > { %v593_v13 = vmul.f32 %v830_v8, %v758_v36 }
 0x6b8   : > { %v579_v11 = vpop.f32.mrf.mxu1 }
 0x6b9   : > { %595 = vst [vmem:[%s214_s19 + $0x8] sm:$0xff] %v593_v13  ;;  %v592_v9 = vmul.f32 %v832_v14, %v579_v11 }
 0x6bb   : > { %594 = vst [vmem:[%s214_s19] sm:$0xff] %v592_v9 }
 0x6bc   : > { %846 = shalt.err (!%p843_p5)
}
 0x6bd   : > { %s847_s6 = scalar_lea.hbm %s1087_s28, 256  ;;  %s851_s9 = scalar_lea.hbm %s1137_s3, 512 }
 0x6be   : > { %p848_p6 = scmp.ne.s32.totalorder %s1087_s28, %s847_s6  ;;  %p852_p10 = scmp.lt.s32.totalorder %s1087_s28, %s1137_s3 }
 0x6bf   : > { %p853_p11 = scmp.lt.s32.totalorder %s851_s9, %s847_s6 }
 0x6c0   : > { %p849_p7 = pnand %p848_p6, %p975_p4 }
 0x6c1   : > { %p854_p12 = por %p853_p11, %p852_p10 }
 0x6c2   : > { %p850_p9 = pneg %p849_p7 }
 0x6c4   : > { %p855_p13 = pnand %p854_p12, %p850_p9 }
 0x6c6   : > { %858 = shalt.err (!%p855_p13)
}
 0x6c7   : > { %s913_s18 = smov 128   ;;  %s914_s19 = smov 8  }
 0x6c8   : > { %759 = dma.vmem_to_hbm [thread:$0]  (%p975_p4), %s1082_s21, 256, %s1087_s28, %s1089_s29, %s913_s18, %s913_s18, %s914_s19  }
 0x6c9 PF: > { %p765_p0 = scmp.ge.s32.totalorder %s909_s17, 2  ;;  %s627_s23 = sand.u32 1, %s889_s12  }
 0x6ca   : > { %s628_s26 = scalar_lea.sflag [#allocation3], %s627_s23 }
 0x6cb   : > { %p762_p1 = pnand %p765_p0, %p982_p8 }
 0x6cd   : > { %p763_p2 = pneg %p762_p1 }
 0x6cf   : > { %884 = dma.done.wait (%p763_p2), %s628_s26, 256  }
 0x6d0   : > { %886 = vsyncadd (%p763_p2), %s628_s26, 4294967040  ;;  %s16_s17 = sadd.s32 1, %s909_s17   ;;  %s1140_s12 = smov %s893_s13 }
 0x6d1   : > { %p13_p3 = scmp.ge.s32.totalorder %s16_s17, 4   ;;  %s1141_s13 = smov %s897_s14 }
 0x6d2   : > { %s1142_s14 = smov %s988_s25  ;;  %s1143_s15 = smov %s905_s16 }
 0x6d3   : > { %s1144_s16 = smov %s1146_s20  ;;  %15 = sbr.rel (!%p13_p3) target bundleno = 4 (0x4), region = 73 }
 0x6d8   :  { %633 = vsyncpa [#allocation3], 1 }
 0x6d9   :  { %635 = vsyncpa [#allocation3 + $0x1], 1 }

</bundles_post_ra>
